<compile_context>
chip_gen: v7x
topology: tpu7x:2x2x1
jax: 0.10.0
libtpu: 0.0.40
codegen_flags: <defaults>
</compile_context>

<pallas_src>
from functools import partial

import jax
import jax.numpy as jnp
from jax.experimental import pallas as pl
from jax.experimental.pallas import tpu as pltpu


def _round_up(v, m):
    return ((v + m - 1) // m) * m


def _vmem_capacity_bytes():
    try:
        return int(pltpu.get_tpu_info().vmem_capacity_bytes)
    except Exception:
        return 64 * 1024 * 1024  # v7x per-TensorCore floor; safe on every generation


def fused_conv_bn_relu_kernel(x_ref, halo_ref, w_ref, b_ref, g_ref, beta_ref,
                              out_ref, sum_ref, sumsq_ref, *,
                              kernel_size, cin, tile_l, num_tiles, out_len,
                              l_pad, eps, inv_count):
    """One length tile: Conv1d(+bias), streaming BN stats; last tile also folds the
    batch statistics into a per-channel scale/shift and applies affine + ReLU to the
    whole resident output block before its single HBM writeback."""
    i = pl.program_id(0)
    single_tile = (num_tiles == 1)

    @pl.when(i == 0)
    def _init():
        sum_ref[...] = jnp.zeros_like(sum_ref)
        sumsq_ref[...] = jnp.zeros_like(sumsq_ref)

    # Lane-aligned working window: this tile plus a 128-wide halo block borrowed from
    # the next tile (second BlockSpec view of the same padded input array).
    xw = jnp.concatenate([x_ref[...], halo_ref[...]], axis=-1).astype(jnp.float32)
    n = xw.shape[0]
    cout = out_ref.shape[1]

    # Conv1d as kernel_size * Cin lane-dense VPU shift-MACs (static unroll, k in 3/5/7).
    acc = jnp.zeros((n, cout, tile_l), jnp.float32) + b_ref[...][None, :, :]
    for t in range(kernel_size):
        xt = xw[:, :, t:t + tile_l]                       # shifted window for tap t
        for ci in range(cin):
            acc = acc + xt[:, ci:ci + 1, :] * w_ref[t * cin + ci][None, :, :]

    if not single_tile:
        # Park the pre-BN conv tile in the resident output block (VMEM only; the single
        # HBM writeback happens after the last grid step).
        start = pl.multiple_of(i * tile_l, 128)
        out_ref[:, :, pl.ds(start, tile_l)] = acc.astype(out_ref.dtype)

    # Streaming per-channel batch statistics.  Only the (possibly ragged) last tile
    # needs the validity mask.
    def _accum(v):
        sum_ref[...] += jnp.sum(v, axis=(0, 2), keepdims=True)[0]
        sumsq_ref[...] += jnp.sum(v * v, axis=(0, 2), keepdims=True)[0]

    if out_len == l_pad:            # static: every position of every tile is valid
        _accum(acc)
    else:
        @pl.when(i < num_tiles - 1)
        def _interior():
            _accum(acc)

        @pl.when(i == num_tiles - 1)
        def _ragged():
            pos = jax.lax.broadcasted_iota(jnp.int32, acc.shape, 2) + i * tile_l
            _accum(jnp.where(pos < out_len, acc, 0.0))

    # TODO(synk): E[x^2]-E[x]^2 in f32 is cancellation-prone for strongly off-center
    # activations; switch to shifted sums / Welford if that regime matters.

    @pl.when(i == num_tiles - 1)
    def _finalize():
        mean = sum_ref[...] * inv_count                                   # (Cout, 1)
        var = jnp.maximum(sumsq_ref[...] * inv_count - mean * mean, 0.0)  # biased var
        scale = g_ref[...] * jax.lax.rsqrt(var + eps)                     # (Cout, 1)
        shift = beta_ref[...] - mean * scale
        if single_tile:
            y = acc * scale[None, :, :] + shift[None, :, :]
        else:
            y = out_ref[...].astype(jnp.float32) * scale[None, :, :] + shift[None, :, :]
        out_ref[...] = jnp.maximum(y, 0.0).astype(out_ref.dtype)


def conv1d_bn_relu(x_ncl, weight, bias, gamma, beta, *, padding, eps=1e-5,
                   tile_l_target=2048):
    """x_ncl: (N, Cin, L); weight: (Cout, Cin, k) (PyTorch layouts) -> (N, Cout, L_out)."""
    n, cin, length = x_ncl.shape
    cout, w_cin, k = weight.shape
    assert w_cin == cin
    out_len = length + 2 * padding - k + 1
    assert out_len > 0
    assert k - 1 <= 128, "halo wider than one 128-lane block"

    itemsize = jnp.dtype(x_ncl.dtype).itemsize
    vmem_cap = _vmem_capacity_bytes()
    budget = (vmem_cap * 3) // 4            # leave headroom for Mosaic internals

    def vmem_estimate(tl):
        nt = (out_len + tl - 1) // tl
        lp = nt * tl
        resident_out = 2 * n * cout * lp * itemsize       # resident block (x2: safety)
        x_tiles = 2 * n * cin * (tl + 128) * itemsize     # tile + halo, double buffered
        workspace = 6 * n * cout * tl * 4                 # acc / f32 temporaries
        return resident_out + x_tiles + workspace + (1 << 20)

    tile_l = max(128, min(_round_up(tile_l_target, 128), _round_up(out_len, 128)))
    while vmem_estimate(tile_l) > budget and tile_l > 128:
        tile_l = max(128, ((tile_l // 2) // 128) * 128)
    if vmem_estimate(tile_l) > budget:
        # TODO(synk): streaming (non-resident-output) fallback for very long sequences.
        raise NotImplementedError("conv output too large to keep resident in VMEM")

    num_tiles = (out_len + tile_l - 1) // tile_l
    l_pad = num_tiles * tile_l
    x_len_pad = l_pad + 128        # every 128-wide halo block stays fully in bounds

    # Single zero-pad along L: conv's implicit padding + tile round-up + halo slack.
    # TODO(synk): fold this pad into the kernel via masked loads to drop one
    # wrapper-side HBM sweep over x.
    xpad = jnp.pad(x_ncl, ((0, 0), (0, 0),
                           (padding, x_len_pad - length - padding)))

    # Weights as (k*Cin, Cout, 1): the kernel reads one (Cout, 1) column per tap.
    w_r = jnp.transpose(weight, (2, 1, 0)).reshape(k * cin, cout)[:, :, None]
    w_r = w_r.astype(jnp.float32)
    b_r = bias.reshape(cout, 1).astype(jnp.float32)
    g_r = gamma.reshape(cout, 1).astype(jnp.float32)
    be_r = beta.reshape(cout, 1).astype(jnp.float32)

    lane_blocks = tile_l // 128
    kern = partial(fused_conv_bn_relu_kernel,
                   kernel_size=k, cin=cin, tile_l=tile_l, num_tiles=num_tiles,
                   out_len=out_len, l_pad=l_pad, eps=float(eps),
                   inv_count=1.0 / float(n * out_len))

    out = pl.pallas_call(
        kern,
        grid=(num_tiles,),
        in_specs=[
            pl.BlockSpec((n, cin, tile_l), lambda i: (0, 0, i)),
            pl.BlockSpec((n, cin, 128), lambda i: (0, 0, (i + 1) * lane_blocks)),
            pl.BlockSpec((k * cin, cout, 1), lambda i: (0, 0, 0)),
            pl.BlockSpec((cout, 1), lambda i: (0, 0)),
            pl.BlockSpec((cout, 1), lambda i: (0, 0)),
            pl.BlockSpec((cout, 1), lambda i: (0, 0)),
        ],
        out_specs=pl.BlockSpec((n, cout, l_pad), lambda i: (0, 0, 0)),
        out_shape=jax.ShapeDtypeStruct((n, cout, l_pad), x_ncl.dtype),
        scratch_shapes=[pltpu.VMEM((cout, 1), jnp.float32),
                        pltpu.VMEM((cout, 1), jnp.float32)],
        compiler_params=pltpu.CompilerParams(
            dimension_semantics=("arbitrary",),   # stats carry + resident output block
            vmem_limit_bytes=int(min(vmem_cap - (8 << 20), 112 << 20))),
    )(xpad, xpad, w_r, b_r, g_r, be_r)

    if l_pad != out_len:
        # TODO(synk): declare the true out_len and mask the ragged final writeback
        # in-kernel to drop this wrapper-side slice.
        out = out[:, :, :out_len]
    return out


def _reference(x_ncl, weight, bias, gamma, beta, padding, eps=1e-5):
    y = jax.lax.conv_general_dilated(
        x_ncl, weight, window_strides=(1,), padding=[(padding, padding)],
        dimension_numbers=("NCH", "OIH", "NCH"))
    y = y + bias[None, :, None]
    mean = jnp.mean(y, axis=(0, 2), keepdims=True)
    var = jnp.mean((y - mean) ** 2, axis=(0, 2), keepdims=True)
    y = (y - mean) / jnp.sqrt(var + eps)
    y = y * gamma[None, :, None] + beta[None, :, None]
    return jnp.maximum(y, 0.0)


def _run_case(key, n, cin, cout, length, k, pad, tile_l_target):
    kx, kw, kb, kg, kbe = jax.random.split(key, 5)
    x = jax.random.normal(kx, (n, cin, length), dtype=jnp.float32)

    bound = 1.0 / float(cin * k) ** 0.5   # PyTorch-style uniform bound for Conv1d
    weight = jax.random.uniform(kw, (cout, cin, k), jnp.float32, -bound, bound)
    bias = jax.random.uniform(kb, (cout,), jnp.float32, -bound, bound)
    gamma = 1.0 + 0.1 * jax.random.normal(kg, (cout,), jnp.float32)
    beta = 0.1 * jax.random.normal(kbe, (cout,), jnp.float32)

    out = conv1d_bn_relu(x, weight, bias, gamma, beta, padding=pad,
                         tile_l_target=tile_l_target)
    out = jax.block_until_ready(out)

    ref = _reference(x, weight, bias, gamma, beta, pad)
    out_len = length + 2 * pad - k + 1
    assert out.shape == (n, cout, out_len), out.shape
    err = float(jnp.max(jnp.abs(out - ref)))
    assert err < 5e-4, f"max abs err {err}"


if __name__ == "__main__":
    key = jax.random.PRNGKey(0)
    k1, k2 = jax.random.split(key)
    # Primary small shape (kernel_size=3, padding=1): collapses to a single grid step,
    # fully fused conv + BN stats + affine + ReLU with one HBM writeback.
    _run_case(k1, n=2, cin=4, cout=8, length=256, k=3, pad=1, tile_l_target=2048)
    # Secondary (kernel_size=5, padding=2) with a forced 128-wide tile to exercise the
    # multi-tile halo path, the ragged-last-tile stats mask and the trailing slice.
    _run_case(k2, n=2, cin=4, cout=8, length=200, k=5, pad=2, tile_l_target=128)
    print("KERNEL_OK")
</pallas_src>

<mosaic_0001>
module attributes {stable_mosaic.version = 11 : i64} {
  func.func @fused_conv_bn_relu_kernel(%arg0: i32, %arg1: memref<2x4x256xf32, #tpu.memory_space<vmem>>, %arg2: memref<2x4x128xf32, #tpu.memory_space<vmem>>, %arg3: memref<12x8x1xf32, #tpu.memory_space<vmem>>, %arg4: memref<8x1xf32, #tpu.memory_space<vmem>>, %arg5: memref<8x1xf32, #tpu.memory_space<vmem>>, %arg6: memref<8x1xf32, #tpu.memory_space<vmem>>, %arg7: memref<2x8x256xf32, #tpu.memory_space<vmem>>, %arg8: memref<8x1xf32, #tpu.memory_space<vmem>>, %arg9: memref<8x1xf32, #tpu.memory_space<vmem>>) attributes {dimension_semantics = [#tpu.dimension_semantics<arbitrary>], iteration_bounds = array<i64: 1>, scalar_prefetch = 0 : i64, scratch_operands = 2 : i64, tpu.core_type = #tpu.core_type<tc>, window_params = [{transform_indices = @transform_0, window_bounds = array<i64: 2, 4, 256>}, {transform_indices = @transform_1, window_bounds = array<i64: 2, 4, 128>}, {pipeline_mode = #tpu.pipeline_mode<synchronous>, transform_indices = @transform_2, window_bounds = array<i64: 12, 8, 1>}, {pipeline_mode = #tpu.pipeline_mode<synchronous>, transform_indices = @transform_3, window_bounds = array<i64: 8, 1>}, {pipeline_mode = #tpu.pipeline_mode<synchronous>, transform_indices = @transform_4, window_bounds = array<i64: 8, 1>}, {pipeline_mode = #tpu.pipeline_mode<synchronous>, transform_indices = @transform_5, window_bounds = array<i64: 8, 1>}, {pipeline_mode = #tpu.pipeline_mode<synchronous>, transform_indices = @transform_6, window_bounds = array<i64: 2, 8, 256>}]} {
    %c0_i32 = arith.constant 0 : i32
    %0 = arith.cmpi eq, %arg0, %c0_i32 : i32
    %1 = arith.extui %0 : i1 to i32
    %c0_i32_0 = arith.constant 0 : i32
    %2 = arith.cmpi ne, %1, %c0_i32_0 : i32
    scf.if %2 {
      %cst_45 = arith.constant 0.000000e+00 : f32
      %126 = vector.broadcast %cst_45 : f32 to vector<8x1xf32>
      %c0_46 = arith.constant 0 : index
      %c0_47 = arith.constant 0 : index
      %127 = vector.load %arg8[%c0_46, %c0_47] : memref<8x1xf32, #tpu.memory_space<vmem>>, vector<8x1xf32>
      tpu.vector_store %arg8[%c0_46, %c0_47], %126 {strides = array<i32>} : memref<8x1xf32, #tpu.memory_space<vmem>>, vector<8x1xf32>,
      %cst_48 = arith.constant 0.000000e+00 : f32
      %128 = vector.broadcast %cst_48 : f32 to vector<8x1xf32>
      %c0_49 = arith.constant 0 : index
      %c0_50 = arith.constant 0 : index
      %129 = vector.load %arg9[%c0_49, %c0_50] : memref<8x1xf32, #tpu.memory_space<vmem>>, vector<8x1xf32>
      tpu.vector_store %arg9[%c0_49, %c0_50], %128 {strides = array<i32>} : memref<8x1xf32, #tpu.memory_space<vmem>>, vector<8x1xf32>,
    } else {
    }
    %c0 = arith.constant 0 : index
    %c0_1 = arith.constant 0 : index
    %c0_2 = arith.constant 0 : index
    %3 = vector.load %arg1[%c0, %c0_1, %c0_2] : memref<2x4x256xf32, #tpu.memory_space<vmem>>, vector<2x4x256xf32>
    %c0_3 = arith.constant 0 : index
    %c0_4 = arith.constant 0 : index
    %c0_5 = arith.constant 0 : index
    %4 = vector.load %arg2[%c0_3, %c0_4, %c0_5] : memref<2x4x128xf32, #tpu.memory_space<vmem>>, vector<2x4x128xf32>
    %5 = tpu.concatenate %3, %4 in 2 : vector<2x4x256xf32>, vector<2x4x128xf32> -> vector<2x4x384xf32>
    %cst = arith.constant 0.000000e+00 : f32
    %6 = vector.broadcast %cst : f32 to vector<2x8x256xf32>
    %c0_6 = arith.constant 0 : index
    %c0_7 = arith.constant 0 : index
    %7 = vector.load %arg4[%c0_6, %c0_7] : memref<8x1xf32, #tpu.memory_space<vmem>>, vector<8x1xf32>
    %8 = vector.shape_cast %7 : vector<8x1xf32> to vector<1x8x1xf32>
    %9 = vector.broadcast %8 : vector<1x8x1xf32> to vector<2x8x256xf32>
    %10 = arith.addf %6, %9 : vector<2x8x256xf32>
    %11 = vector.extract_strided_slice %5 {offsets = [0, 0, 0], sizes = [2, 4, 256], strides = [1, 1, 1]} : vector<2x4x384xf32> to vector<2x4x256xf32>
    %12 = vector.extract_strided_slice %11 {offsets = [0, 0, 0], sizes = [2, 1, 256], strides = [1, 1, 1]} : vector<2x4x256xf32> to vector<2x1x256xf32>
    %c0_8 = arith.constant 0 : index
    %c0_9 = arith.constant 0 : index
    %c0_10 = arith.constant 0 : index
    %13 = vector.load %arg3[%c0_8, %c0_9, %c0_10] : memref<12x8x1xf32, #tpu.memory_space<vmem>>, vector<1x8x1xf32>
    %14 = vector.shape_cast %13 : vector<1x8x1xf32> to vector<8x1xf32>
    %15 = vector.shape_cast %14 : vector<8x1xf32> to vector<1x8x1xf32>
    %16 = vector.broadcast %12 : vector<2x1x256xf32> to vector<2x8x256xf32>
    %17 = vector.broadcast %15 : vector<1x8x1xf32> to vector<2x8x256xf32>
    %18 = arith.mulf %16, %17 : vector<2x8x256xf32>
    %19 = arith.addf %10, %18 : vector<2x8x256xf32>
    %20 = vector.extract_strided_slice %11 {offsets = [0, 1, 0], sizes = [2, 1, 256], strides = [1, 1, 1]} : vector<2x4x256xf32> to vector<2x1x256xf32>
    %c1 = arith.constant 1 : index
    %c0_11 = arith.constant 0 : index
    %c0_12 = arith.constant 0 : index
    %21 = vector.load %arg3[%c1, %c0_11, %c0_12] : memref<12x8x1xf32, #tpu.memory_space<vmem>>, vector<1x8x1xf32>
    %22 = vector.shape_cast %21 : vector<1x8x1xf32> to vector<8x1xf32>
    %23 = vector.shape_cast %22 : vector<8x1xf32> to vector<1x8x1xf32>
    %24 = vector.broadcast %20 : vector<2x1x256xf32> to vector<2x8x256xf32>
    %25 = vector.broadcast %23 : vector<1x8x1xf32> to vector<2x8x256xf32>
    %26 = arith.mulf %24, %25 : vector<2x8x256xf32>
    %27 = arith.addf %19, %26 : vector<2x8x256xf32>
    %28 = vector.extract_strided_slice %11 {offsets = [0, 2, 0], sizes = [2, 1, 256], strides = [1, 1, 1]} : vector<2x4x256xf32> to vector<2x1x256xf32>
    %c2 = arith.constant 2 : index
    %c0_13 = arith.constant 0 : index
    %c0_14 = arith.constant 0 : index
    %29 = vector.load %arg3[%c2, %c0_13, %c0_14] : memref<12x8x1xf32, #tpu.memory_space<vmem>>, vector<1x8x1xf32>
    %30 = vector.shape_cast %29 : vector<1x8x1xf32> to vector<8x1xf32>
    %31 = vector.shape_cast %30 : vector<8x1xf32> to vector<1x8x1xf32>
    %32 = vector.broadcast %28 : vector<2x1x256xf32> to vector<2x8x256xf32>
    %33 = vector.broadcast %31 : vector<1x8x1xf32> to vector<2x8x256xf32>
    %34 = arith.mulf %32, %33 : vector<2x8x256xf32>
    %35 = arith.addf %27, %34 : vector<2x8x256xf32>
    %36 = vector.extract_strided_slice %11 {offsets = [0, 3, 0], sizes = [2, 1, 256], strides = [1, 1, 1]} : vector<2x4x256xf32> to vector<2x1x256xf32>
    %c3 = arith.constant 3 : index
    %c0_15 = arith.constant 0 : index
    %c0_16 = arith.constant 0 : index
    %37 = vector.load %arg3[%c3, %c0_15, %c0_16] : memref<12x8x1xf32, #tpu.memory_space<vmem>>, vector<1x8x1xf32>
    %38 = vector.shape_cast %37 : vector<1x8x1xf32> to vector<8x1xf32>
    %39 = vector.shape_cast %38 : vector<8x1xf32> to vector<1x8x1xf32>
    %40 = vector.broadcast %36 : vector<2x1x256xf32> to vector<2x8x256xf32>
    %41 = vector.broadcast %39 : vector<1x8x1xf32> to vector<2x8x256xf32>
    %42 = arith.mulf %40, %41 : vector<2x8x256xf32>
    %43 = arith.addf %35, %42 : vector<2x8x256xf32>
    %44 = vector.extract_strided_slice %5 {offsets = [0, 0, 1], sizes = [2, 4, 256], strides = [1, 1, 1]} : vector<2x4x384xf32> to vector<2x4x256xf32>
    %45 = vector.extract_strided_slice %44 {offsets = [0, 0, 0], sizes = [2, 1, 256], strides = [1, 1, 1]} : vector<2x4x256xf32> to vector<2x1x256xf32>
    %c4 = arith.constant 4 : index
    %c0_17 = arith.constant 0 : index
    %c0_18 = arith.constant 0 : index
    %46 = vector.load %arg3[%c4, %c0_17, %c0_18] : memref<12x8x1xf32, #tpu.memory_space<vmem>>, vector<1x8x1xf32>
    %47 = vector.shape_cast %46 : vector<1x8x1xf32> to vector<8x1xf32>
    %48 = vector.shape_cast %47 : vector<8x1xf32> to vector<1x8x1xf32>
    %49 = vector.broadcast %45 : vector<2x1x256xf32> to vector<2x8x256xf32>
    %50 = vector.broadcast %48 : vector<1x8x1xf32> to vector<2x8x256xf32>
    %51 = arith.mulf %49, %50 : vector<2x8x256xf32>
    %52 = arith.addf %43, %51 : vector<2x8x256xf32>
    %53 = vector.extract_strided_slice %44 {offsets = [0, 1, 0], sizes = [2, 1, 256], strides = [1, 1, 1]} : vector<2x4x256xf32> to vector<2x1x256xf32>
    %c5 = arith.constant 5 : index
    %c0_19 = arith.constant 0 : index
    %c0_20 = arith.constant 0 : index
    %54 = vector.load %arg3[%c5, %c0_19, %c0_20] : memref<12x8x1xf32, #tpu.memory_space<vmem>>, vector<1x8x1xf32>
    %55 = vector.shape_cast %54 : vector<1x8x1xf32> to vector<8x1xf32>
    %56 = vector.shape_cast %55 : vector<8x1xf32> to vector<1x8x1xf32>
    %57 = vector.broadcast %53 : vector<2x1x256xf32> to vector<2x8x256xf32>
    %58 = vector.broadcast %56 : vector<1x8x1xf32> to vector<2x8x256xf32>
    %59 = arith.mulf %57, %58 : vector<2x8x256xf32>
    %60 = arith.addf %52, %59 : vector<2x8x256xf32>
    %61 = vector.extract_strided_slice %44 {offsets = [0, 2, 0], sizes = [2, 1, 256], strides = [1, 1, 1]} : vector<2x4x256xf32> to vector<2x1x256xf32>
    %c6 = arith.constant 6 : index
    %c0_21 = arith.constant 0 : index
    %c0_22 = arith.constant 0 : index
    %62 = vector.load %arg3[%c6, %c0_21, %c0_22] : memref<12x8x1xf32, #tpu.memory_space<vmem>>, vector<1x8x1xf32>
    %63 = vector.shape_cast %62 : vector<1x8x1xf32> to vector<8x1xf32>
    %64 = vector.shape_cast %63 : vector<8x1xf32> to vector<1x8x1xf32>
    %65 = vector.broadcast %61 : vector<2x1x256xf32> to vector<2x8x256xf32>
    %66 = vector.broadcast %64 : vector<1x8x1xf32> to vector<2x8x256xf32>
    %67 = arith.mulf %65, %66 : vector<2x8x256xf32>
    %68 = arith.addf %60, %67 : vector<2x8x256xf32>
    %69 = vector.extract_strided_slice %44 {offsets = [0, 3, 0], sizes = [2, 1, 256], strides = [1, 1, 1]} : vector<2x4x256xf32> to vector<2x1x256xf32>
    %c7 = arith.constant 7 : index
    %c0_23 = arith.constant 0 : index
    %c0_24 = arith.constant 0 : index
    %70 = vector.load %arg3[%c7, %c0_23, %c0_24] : memref<12x8x1xf32, #tpu.memory_space<vmem>>, vector<1x8x1xf32>
    %71 = vector.shape_cast %70 : vector<1x8x1xf32> to vector<8x1xf32>
    %72 = vector.shape_cast %71 : vector<8x1xf32> to vector<1x8x1xf32>
    %73 = vector.broadcast %69 : vector<2x1x256xf32> to vector<2x8x256xf32>
    %74 = vector.broadcast %72 : vector<1x8x1xf32> to vector<2x8x256xf32>
    %75 = arith.mulf %73, %74 : vector<2x8x256xf32>
    %76 = arith.addf %68, %75 : vector<2x8x256xf32>
    %77 = vector.extract_strided_slice %5 {offsets = [0, 0, 2], sizes = [2, 4, 256], strides = [1, 1, 1]} : vector<2x4x384xf32> to vector<2x4x256xf32>
    %78 = vector.extract_strided_slice %77 {offsets = [0, 0, 0], sizes = [2, 1, 256], strides = [1, 1, 1]} : vector<2x4x256xf32> to vector<2x1x256xf32>
    %c8 = arith.constant 8 : index
    %c0_25 = arith.constant 0 : index
    %c0_26 = arith.constant 0 : index
    %79 = vector.load %arg3[%c8, %c0_25, %c0_26] : memref<12x8x1xf32, #tpu.memory_space<vmem>>, vector<1x8x1xf32>
    %80 = vector.shape_cast %79 : vector<1x8x1xf32> to vector<8x1xf32>
    %81 = vector.shape_cast %80 : vector<8x1xf32> to vector<1x8x1xf32>
    %82 = vector.broadcast %78 : vector<2x1x256xf32> to vector<2x8x256xf32>
    %83 = vector.broadcast %81 : vector<1x8x1xf32> to vector<2x8x256xf32>
    %84 = arith.mulf %82, %83 : vector<2x8x256xf32>
    %85 = arith.addf %76, %84 : vector<2x8x256xf32>
    %86 = vector.extract_strided_slice %77 {offsets = [0, 1, 0], sizes = [2, 1, 256], strides = [1, 1, 1]} : vector<2x4x256xf32> to vector<2x1x256xf32>
    %c9 = arith.constant 9 : index
    %c0_27 = arith.constant 0 : index
    %c0_28 = arith.constant 0 : index
    %87 = vector.load %arg3[%c9, %c0_27, %c0_28] : memref<12x8x1xf32, #tpu.memory_space<vmem>>, vector<1x8x1xf32>
    %88 = vector.shape_cast %87 : vector<1x8x1xf32> to vector<8x1xf32>
    %89 = vector.shape_cast %88 : vector<8x1xf32> to vector<1x8x1xf32>
    %90 = vector.broadcast %86 : vector<2x1x256xf32> to vector<2x8x256xf32>
    %91 = vector.broadcast %89 : vector<1x8x1xf32> to vector<2x8x256xf32>
    %92 = arith.mulf %90, %91 : vector<2x8x256xf32>
    %93 = arith.addf %85, %92 : vector<2x8x256xf32>
    %94 = vector.extract_strided_slice %77 {offsets = [0, 2, 0], sizes = [2, 1, 256], strides = [1, 1, 1]} : vector<2x4x256xf32> to vector<2x1x256xf32>
    %c10 = arith.constant 10 : index
    %c0_29 = arith.constant 0 : index
    %c0_30 = arith.constant 0 : index
    %95 = vector.load %arg3[%c10, %c0_29, %c0_30] : memref<12x8x1xf32, #tpu.memory_space<vmem>>, vector<1x8x1xf32>
    %96 = vector.shape_cast %95 : vector<1x8x1xf32> to vector<8x1xf32>
    %97 = vector.shape_cast %96 : vector<8x1xf32> to vector<1x8x1xf32>
    %98 = vector.broadcast %94 : vector<2x1x256xf32> to vector<2x8x256xf32>
    %99 = vector.broadcast %97 : vector<1x8x1xf32> to vector<2x8x256xf32>
    %100 = arith.mulf %98, %99 : vector<2x8x256xf32>
    %101 = arith.addf %93, %100 : vector<2x8x256xf32>
    %102 = vector.extract_strided_slice %77 {offsets = [0, 3, 0], sizes = [2, 1, 256], strides = [1, 1, 1]} : vector<2x4x256xf32> to vector<2x1x256xf32>
    %c11 = arith.constant 11 : index
    %c0_31 = arith.constant 0 : index
    %c0_32 = arith.constant 0 : index
    %103 = vector.load %arg3[%c11, %c0_31, %c0_32] : memref<12x8x1xf32, #tpu.memory_space<vmem>>, vector<1x8x1xf32>
    %104 = vector.shape_cast %103 : vector<1x8x1xf32> to vector<8x1xf32>
    %105 = vector.shape_cast %104 : vector<8x1xf32> to vector<1x8x1xf32>
    %106 = vector.broadcast %102 : vector<2x1x256xf32> to vector<2x8x256xf32>
    %107 = vector.broadcast %105 : vector<1x8x1xf32> to vector<2x8x256xf32>
    %108 = arith.mulf %106, %107 : vector<2x8x256xf32>
    %109 = arith.addf %101, %108 : vector<2x8x256xf32>
    %c0_33 = arith.constant 0 : index
    %c0_34 = arith.constant 0 : index
    %110 = vector.load %arg8[%c0_33, %c0_34] : memref<8x1xf32, #tpu.memory_space<vmem>>, vector<8x1xf32>
    %cst_35 = arith.constant dense<0.000000e+00> : vector<8xf32>
    %111 = vector.multi_reduction <add>, %109, %cst_35 [0, 2] : vector<2x8x256xf32> to vector<8xf32>
    %112 = vector.shape_cast %111 : vector<8xf32> to vector<1x8x1xf32>
    %113 = vector.shape_cast %112 : vector<1x8x1xf32> to vector<8x1xf32>
    %114 = arith.addf %110, %113 : vector<8x1xf32>
    %c0_36 = arith.constant 0 : index
    %c0_37 = arith.constant 0 : index
    %115 = vector.load %arg8[%c0_36, %c0_37] : memref<8x1xf32, #tpu.memory_space<vmem>>, vector<8x1xf32>
    tpu.vector_store %arg8[%c0_36, %c0_37], %114 {strides = array<i32>} : memref<8x1xf32, #tpu.memory_space<vmem>>, vector<8x1xf32>,
    %c0_38 = arith.constant 0 : index
    %c0_39 = arith.constant 0 : index
    %116 = vector.load %arg9[%c0_38, %c0_39] : memref<8x1xf32, #tpu.memory_space<vmem>>, vector<8x1xf32>
    %117 = arith.mulf %109, %109 : vector<2x8x256xf32>
    %cst_40 = arith.constant dense<0.000000e+00> : vector<8xf32>
    %118 = vector.multi_reduction <add>, %117, %cst_40 [0, 2] : vector<2x8x256xf32> to vector<8xf32>
    %119 = vector.shape_cast %118 : vector<8xf32> to vector<1x8x1xf32>
    %120 = vector.shape_cast %119 : vector<1x8x1xf32> to vector<8x1xf32>
    %121 = arith.addf %116, %120 : vector<8x1xf32>
    %c0_41 = arith.constant 0 : index
    %c0_42 = arith.constant 0 : index
    %122 = vector.load %arg9[%c0_41, %c0_42] : memref<8x1xf32, #tpu.memory_space<vmem>>, vector<8x1xf32>
    tpu.vector_store %arg9[%c0_41, %c0_42], %121 {strides = array<i32>} : memref<8x1xf32, #tpu.memory_space<vmem>>, vector<8x1xf32>,
    %c0_i32_43 = arith.constant 0 : i32
    %123 = arith.cmpi eq, %arg0, %c0_i32_43 : i32
    %124 = arith.extui %123 : i1 to i32
    %c0_i32_44 = arith.constant 0 : i32
    %125 = arith.cmpi ne, %124, %c0_i32_44 : i32
    scf.if %125 {
      %c0_45 = arith.constant 0 : index
      %c0_46 = arith.constant 0 : index
      %126 = vector.load %arg8[%c0_45, %c0_46] : memref<8x1xf32, #tpu.memory_space<vmem>>, vector<8x1xf32>
      %cst_47 = arith.constant 0.001953125 : f32
      %127 = vector.broadcast %cst_47 : f32 to vector<8x1xf32>
      %128 = arith.mulf %126, %127 : vector<8x1xf32>
      %c0_48 = arith.constant 0 : index
      %c0_49 = arith.constant 0 : index
      %129 = vector.load %arg9[%c0_48, %c0_49] : memref<8x1xf32, #tpu.memory_space<vmem>>, vector<8x1xf32>
      %cst_50 = arith.constant 0.001953125 : f32
      %130 = vector.broadcast %cst_50 : f32 to vector<8x1xf32>
      %131 = arith.mulf %129, %130 : vector<8x1xf32>
      %132 = arith.mulf %128, %128 : vector<8x1xf32>
      %133 = arith.subf %131, %132 : vector<8x1xf32>
      %cst_51 = arith.constant 0.000000e+00 : f32
      %134 = vector.broadcast %cst_51 : f32 to vector<8x1xf32>
      %135 = arith.maximumf %133, %134 : vector<8x1xf32>
      %c0_52 = arith.constant 0 : index
      %c0_53 = arith.constant 0 : index
      %136 = vector.load %arg5[%c0_52, %c0_53] : memref<8x1xf32, #tpu.memory_space<vmem>>, vector<8x1xf32>
      %cst_54 = arith.constant 9.99999974E-6 : f32
      %137 = vector.broadcast %cst_54 : f32 to vector<8x1xf32>
      %138 = arith.addf %135, %137 : vector<8x1xf32>
      %139 = math.rsqrt %138 : vector<8x1xf32>
      %140 = arith.mulf %136, %139 : vector<8x1xf32>
      %c0_55 = arith.constant 0 : index
      %c0_56 = arith.constant 0 : index
      %141 = vector.load %arg6[%c0_55, %c0_56] : memref<8x1xf32, #tpu.memory_space<vmem>>, vector<8x1xf32>
      %142 = arith.mulf %128, %140 : vector<8x1xf32>
      %143 = arith.subf %141, %142 : vector<8x1xf32>
      %144 = vector.shape_cast %140 : vector<8x1xf32> to vector<1x8x1xf32>
      %145 = vector.broadcast %144 : vector<1x8x1xf32> to vector<2x8x256xf32>
      %146 = arith.mulf %109, %145 : vector<2x8x256xf32>
      %147 = vector.shape_cast %143 : vector<8x1xf32> to vector<1x8x1xf32>
      %148 = vector.broadcast %147 : vector<1x8x1xf32> to vector<2x8x256xf32>
      %149 = arith.addf %146, %148 : vector<2x8x256xf32>
      %cst_57 = arith.constant 0.000000e+00 : f32
      %150 = vector.broadcast %cst_57 : f32 to vector<2x8x256xf32>
      %151 = arith.maximumf %149, %150 : vector<2x8x256xf32>
      %c0_58 = arith.constant 0 : index
      %c0_59 = arith.constant 0 : index
      %c0_60 = arith.constant 0 : index
      %152 = vector.load %arg7[%c0_58, %c0_59, %c0_60] : memref<2x8x256xf32, #tpu.memory_space<vmem>>, vector<2x8x256xf32>
      tpu.vector_store %arg7[%c0_58, %c0_59, %c0_60], %151 {strides = array<i32>} : memref<2x8x256xf32, #tpu.memory_space<vmem>>, vector<2x8x256xf32>,
    } else {
    }
    return
  }
  func.func @transform_0(%arg0: i32) -> (i32, i32, i32) {
    %c0_i32 = arith.constant 0 : i32
    %c0_i32_0 = arith.constant 0 : i32
    %c0_i32_1 = arith.constant 0 : i32
    return %c0_i32, %c0_i32_0, %arg0 : i32, i32, i32
  }
  func.func @transform_1(%arg0: i32) -> (i32, i32, i32) {
    %c1_i32 = arith.constant 1 : i32
    %0 = arith.addi %arg0, %c1_i32 : i32
    %c2_i32 = arith.constant 2 : i32
    %1 = arith.muli %0, %c2_i32 : i32
    %c0_i32 = arith.constant 0 : i32
    %c0_i32_0 = arith.constant 0 : i32
    %c0_i32_1 = arith.constant 0 : i32
    return %c0_i32, %c0_i32_0, %1 : i32, i32, i32
  }
  func.func @transform_2(%arg0: i32) -> (i32, i32, i32) {
    %c0_i32 = arith.constant 0 : i32
    %c0_i32_0 = arith.constant 0 : i32
    %c0_i32_1 = arith.constant 0 : i32
    %c0_i32_2 = arith.constant 0 : i32
    return %c0_i32, %c0_i32_0, %c0_i32_1 : i32, i32, i32
  }
  func.func @transform_3(%arg0: i32) -> (i32, i32) {
    %c0_i32 = arith.constant 0 : i32
    %c0_i32_0 = arith.constant 0 : i32
    %c0_i32_1 = arith.constant 0 : i32
    return %c0_i32, %c0_i32_0 : i32, i32
  }
  func.func @transform_4(%arg0: i32) -> (i32, i32) {
    %c0_i32 = arith.constant 0 : i32
    %c0_i32_0 = arith.constant 0 : i32
    %c0_i32_1 = arith.constant 0 : i32
    return %c0_i32, %c0_i32_0 : i32, i32
  }
  func.func @transform_5(%arg0: i32) -> (i32, i32) {
    %c0_i32 = arith.constant 0 : i32
    %c0_i32_0 = arith.constant 0 : i32
    %c0_i32_1 = arith.constant 0 : i32
    return %c0_i32, %c0_i32_0 : i32, i32
  }
  func.func @transform_6(%arg0: i32) -> (i32, i32, i32) {
    %c0_i32 = arith.constant 0 : i32
    %c0_i32_0 = arith.constant 0 : i32
    %c0_i32_1 = arith.constant 0 : i32
    %c0_i32_2 = arith.constant 0 : i32
    return %c0_i32, %c0_i32_0, %c0_i32_1 : i32, i32, i32
  }
}

</mosaic_0001>

<bundles_post_ra>
// kernel: tpu_custom_call.1
= control target key start
LH: loop header
LB: loop body
LE: loop exit
PB: predicated region body
PF: predicated region fallthrough
CT: control target
= control target key end

     0   :  { %v777_v2 = vmov 0   ;;  %s1184_s0 = inlined_call_operand.vmem [shape: f32[2,4,384], index: 0, kind: input, shape index: {}]   ;;  %s1185_s1 = inlined_call_operand.vmem [shape: f32[2,4,384], index: 1, kind: input, shape index: {}]   ;;  %s1186_s2 = inlined_call_operand.vmem [shape: f32[12,8,1], index: 2, kind: input, shape index: {}]   ;;  %s1187_s3 = inlined_call_operand.vmem [shape: f32[8,1], index: 3, kind: input, shape index: {}]   ;;  %s1188_s4 = inlined_call_operand.vmem [shape: f32[8,1], index: 4, kind: input, shape index: {}]   ;;  %s1189_s5 = inlined_call_operand.vmem [shape: f32[8,1], index: 5, kind: input, shape index: {}]   ;;  %s1190_s6 = inlined_call_operand.hbm [shape: f32[2,8,256], index: 6, kind: output, shape index: {}]  }
   0x1   :  { %v732_v0 = vld [vmem:[%s1186_s2 + $0x20] sm:$0xff]  ;;  %v734_v1 = vld [vmem:[%s1186_s2 + $0x30] sm:$0xff]  ;;  %747 = vset.pattern.permute.xlu0 %v777_v2  ;;  %748 = vset.pattern.permute.xlu1 %v777_v2  ;;  %v733_v3 = vld [vmem:[%s1186_s2 + $0x28] sm:$0xff] }
   0x2   :  { %272 = vperm.xlu0 %747, %v732_v0   ;;  %375 = vperm.xlu1 %748, %v734_v1   ;;  %v735_v4 = vld [vmem:[%s1186_s2 + $0x38] sm:$0xff]  ;;  %v727_v5 = vld [vmem:[%s1185_s1 + $0x8] sm:$0xf]  ;;  %v728_v6 = vld [vmem:[%s1185_s1 + $0x14] sm:$0xf] }
   0x3   :  { %72 = vst [vmem:[#allocation5] sm:$0xf] %v727_v5 }
   0x4   :  { %11 = vsyncpa [#allocation7], 0  ;;  %74 = vst [vmem:[#allocation5 + $0x4] sm:$0xf] %v728_v6  ;;  %v736_v7 = vld [vmem:[%s1186_s2 + $0x40] sm:$0xff]  ;;  %v737_v8 = vld [vmem:[%s1186_s2 + $0x48] sm:$0xff]  ;;  %v138_v16 = vlaneseq }
   0x5   :  { %v738_v9 = vld [vmem:[%s1186_s2 + $0x50] sm:$0xff]  ;;  %v739_v10 = vld [vmem:[%s1186_s2 + $0x58] sm:$0xff]  ;;  %v137_v11 = vld [vmem:[%s1186_s2] sm:$0xff]  ;;  %vm117_vm0 = vcmask 7168   ;;  %vm299_vm1 = vcmask 1039360   ;;  %vm496_vm2 = vcmask 1031168  }
   0x6   :  { %324 = vperm.xlu0 %747, %v733_v3   ;;  %426 = vperm.xlu1 %748, %v735_v4   ;;  %v130_v12 = vld [vmem:[%s1187_s3] sm:$0xff]  ;;  %v729_v13 = vld [vmem:[%s1186_s2 + $0x8] sm:$0xff]  ;;  %v730_v14 = vld [vmem:[%s1186_s2 + $0x10] sm:$0xff]  ;;  %v139_v17 = vshrl.u32 %v138_v16, 7  ;;  %s781_s9 = smov [#allocation6]  }
   0x7   :  { %v731_v15 = vld [vmem:[%s1186_s2 + $0x18] sm:$0xff]  ;;  %v43_v18 = vld [vmem:[%s1184_s0] sm:$0xff]  ;;  %v876_v24 = vld [vmem:[%s1184_s0 + $0xc] sm:$0xff]  ;;  %s778_s0 = smov 127   ;;  %s779_s2 = smov 126  }
   0x8   :  { %v140_v19 = vsub.s32 0, %v139_v17  ;;  %v126_v20 = vcombine.high %v43_v18, %v43_v18  ;;  %v883_v28 = vsub.s32 1, %v139_v17  ;;  %v127_v32 = vcombine.high %v876_v24, %v876_v24  ;;  %s707_s10 = sshll.u32 %s781_s9, 4  ;;  %s708_s10 = int_to_ptr.vmem [resolvable:$true] %s707_s10 }
   0x9   :  { %v925_v46 = vsub.s32 2, %v139_v17  ;;  %v942_v53 = vsub.s32 3, %v139_v17  ;;  %p758_p1 = scmp.lt.s32.totalorder %s708_s10, %s708_s10 }
   0xa   :  { %469 = vperm.xlu0 %747, %v736_v7   ;;  %513 = vperm.xlu1 %748, %v737_v8   ;;  %v867_v21 = vrot.slane %v43_v18, %v140_v19  ;;  %v869_v22 = vrot.slane %v126_v20, %v140_v19  ;;  %v871_v23 = vld [vmem:[#allocation5] sm:$0xf]  ;;  %v881_v27 = vrot.slane %v876_v24, %v140_v19 }
   0xb   :  { %v888_v31 = vrot.slane %v871_v23, %v140_v19  ;;  %v900_v37 = vrot.slane %v127_v32, %v140_v19  ;;  %v903_v38 = vrot.slane %v43_v18, %v883_v28  ;;  %v915_v43 = vrot.slane %v126_v20, %v883_v28  ;;  %v921_v45 = vld [vmem:[#allocation5 + $0x4] sm:$0xf] }
   0xc   :  { %v919_v44 = vrot.slane %v871_v23, %v883_v28  ;;  %v932_v49 = vrot.slane %v921_v45, %v140_v19  ;;  %v940_v52 = vrot.slane %v876_v24, %v883_v28  ;;  %v947_v54 = vrot.slane %v127_v32, %v883_v28 }
   0xd   :  { %v950_v55 = vrot.slane %v43_v18, %v925_v46  ;;  %v954_v59 = vrot.slane %v126_v20, %v925_v46  ;;  %v958_v60 = vrot.slane %v876_v24, %v925_v46  ;;  %v961_v61 = vrot.slane %v127_v32, %v925_v46 }
   0xe   :  { %556 = vperm.xlu0 %747, %v738_v9   ;;  %599 = vperm.xlu1 %748, %v739_v10   ;;  %v970_v3 = vrot.slane %v43_v18, %v942_v53  ;;  %v973_v4 = vrot.slane %v126_v20, %v942_v53  ;;  %v977_v5 = vrot.slane %v871_v23, %v925_v46 }
  0x12   :  { %156 = vperm.xlu0 %747, %v137_v11   ;;  %133 = vperm.xlu1 %748, %v130_v12  }
  0x16   :  { %187 = vperm.xlu0 %747, %v729_v13   ;;  %218 = vperm.xlu1 %748, %v730_v14   ;;  %v987_v14 = vrot.slane %v876_v24, %v942_v53 }
  0x1a   :  { %249 = vperm.xlu0 %747, %v731_v15   ;;  %v990_v15 = vrot.slane %v127_v32, %v942_v53 }
  0x81   :  { %v273_v25 = vpop.permute.xlu0 %272  ;;  %v878_v26 = vpop.permute.xlu1 %375 }
  0x82   :  { %v275_v29 = vmul.f32 %v273_v25, %v867_v21  ;;  %v276_v30 = vmul.f32 %v273_v25, %v869_v22  ;;  %v277_v35 = vmul.f32 %v273_v25, %v888_v31  ;;  %v278_v36 = vmul.f32 %v273_v25, %v881_v27 }
  0x83   :  { %v279_v41 = vmul.f32 %v273_v25, %v900_v37  ;;  %v280_v58 = vmul.f32 %v273_v25, %v932_v49  ;;  %v378_v13 = vmul.f32 %v878_v26, %v950_v55 }
  0x84   :  { %287 = vrot.lane.b32.xlu1 %v275_v29, %s778_s0  ;;  %289 = vrot.lane.b32.xlu0 %v276_v30, %s778_s0 }
  0x85   :  { %v894_v33 = vpop.permute.xlu0 %324  ;;  %v896_v34 = vpop.permute.xlu1 %426 }
  0x86   :  { %v327_v42 = vmul.f32 %v894_v33, %v903_v38  ;;  %v328_v50 = vmul.f32 %v894_v33, %v915_v43  ;;  %v329_v51 = vmul.f32 %v894_v33, %v919_v44  ;;  %v330_v2 = vmul.f32 %v894_v33, %v940_v52 }
  0x87   :  { %v331_v12 = vmul.f32 %v894_v33, %v947_v54 }
  0x88   :  { %291 = vrot.lane.b32.xlu1 %v277_v35, %s778_s0  ;;  %293 = vrot.lane.b32.xlu0 %v278_v36, %s778_s0 }
  0x89   :  { %v907_v39 = vpop.permute.xlu0 %469  ;;  %v909_v40 = vpop.permute.xlu1 %513 }
  0x8c   :  { %295 = vrot.lane.b32.xlu1 %v279_v41, %s778_s0  ;;  %339 = vrot.lane.b32.xlu0 %v327_v42, %s778_s0  ;;  %v379_v42 = vmul.f32 %v878_v26, %v954_v59 }
  0x8d   :  { %v927_v47 = vpop.permute.xlu0 %556  ;;  %v929_v48 = vpop.permute.xlu1 %599 }
  0x90   :  { %341 = vrot.lane.b32.xlu1 %v328_v50, %s778_s0  ;;  %343 = vrot.lane.b32.xlu0 %v329_v51, %s778_s0  ;;  %v380_v50 = vmul.f32 %v878_v26, %v977_v5  ;;  %v1008_v51 = vrot.slane %v921_v45, %v883_v28 }
  0x91   :  { %v157_v56 = vpop.permute.xlu0 %156  ;;  %v134_v57 = vpop.permute.xlu1 %133 }
  0x92   :  { %v159_v62 = vmul.f32 %v157_v56, %v867_v21  ;;  %v160_v63 = vmul.f32 %v157_v56, %v869_v22  ;;  %v161_v0 = vmul.f32 %v157_v56, %v881_v27  ;;  %v162_v1 = vmul.f32 %v157_v56, %v900_v37 }
  0x94   :  { %v163_v6 = vadd.f32 %v159_v62, %v134_v57  ;;  %v164_v7 = vadd.f32 %v160_v63, %v134_v57  ;;  %v165_v8 = vadd.f32 %v161_v0, %v134_v57  ;;  %v166_v9 = vadd.f32 %v162_v1, %v134_v57  ;;  %297 = vrot.lane.b32.xlu1 %v280_v58, %s778_s0 }
  0x95   :  { %345 = vrot.lane.b32.xlu0 %v330_v2, %s778_s0  ;;  %v188_v10 = vpop.permute.xlu0 %187  ;;  %v219_v11 = vpop.permute.xlu1 %218 }
  0x96   :  { %v190_v16 = vmul.f32 %v188_v10, %v903_v38  ;;  %v191_v17 = vmul.f32 %v188_v10, %v915_v43  ;;  %v192_v18 = vmul.f32 %v188_v10, %v940_v52  ;;  %v193_v19 = vmul.f32 %v188_v10, %v947_v54 }
  0x97   :  { %v221_v20 = vmul.f32 %v219_v11, %v950_v55  ;;  %v222_v25 = vmul.f32 %v219_v11, %v954_v59  ;;  %v223_v29 = vmul.f32 %v219_v11, %v958_v60  ;;  %v224_v24 = vmul.f32 %v219_v11, %v961_v61 }
  0x98   :  { %v194_v30 = vadd.f32 %v190_v16, %v163_v6  ;;  %v195_v35 = vadd.f32 %v191_v17, %v164_v7  ;;  %v196_v32 = vadd.f32 %v192_v18, %v165_v8  ;;  %v197_v36 = vadd.f32 %v193_v19, %v166_v9  ;;  %347 = vrot.lane.b32.xlu1 %v331_v12, %s778_s0 }
  0x99   :  { %390 = vrot.lane.b32.xlu0 %v378_v13, %s778_s0  ;;  %v250_v41 = vpop.permute.xlu0 %249  ;;  %v332_v9 = vmul.f32 %v894_v33, %v1008_v51  ;;  %v381_v10 = vmul.f32 %v878_v26, %v958_v60  ;;  %v382_v11 = vmul.f32 %v878_v26, %v961_v61  ;;  %v429_v12 = vmul.f32 %v896_v34, %v970_v3 }
  0x9a   :  { %v252_v56 = vmul.f32 %v250_v41, %v970_v3  ;;  %v253_v57 = vmul.f32 %v250_v41, %v973_v4  ;;  %v254_v58 = vmul.f32 %v250_v41, %v987_v14  ;;  %v255_v62 = vmul.f32 %v250_v41, %v990_v15 }
  0x9b   :  { %v225_v63 = vadd.f32 %v221_v20, %v194_v30  ;;  %v226_v0 = vadd.f32 %v222_v25, %v195_v35  ;;  %v227_v1 = vadd.f32 %v223_v29, %v196_v32  ;;  %v228_v2 = vadd.f32 %v224_v24, %v197_v36 }
  0x9c   :  { %392 = vrot.lane.b32.xlu1 %v379_v42, %s778_s0  ;;  %v419_v13 = vrot.slane %v871_v23, %v942_v53  ;;  %v430_v33 = vmul.f32 %v896_v34, %v973_v4  ;;  %v372_v17 = vrot.slane %v921_v45, %v925_v46  ;;  %v432_v23 = vmul.f32 %v896_v34, %v987_v14 }
  0x9d   :  { %394 = vrot.lane.b32.xlu0 %v380_v50, %s778_s0  ;;  %v1016_v6 = vadd.f32 %v252_v56, %v225_v63  ;;  %v1018_v28 = vadd.f32 %v253_v57, %v226_v0  ;;  %v1020_v7 = vadd.f32 %v254_v58, %v227_v1  ;;  %v1022_v8 = vadd.f32 %v255_v62, %v228_v2 }
  0x9e   :  { %v431_v16 = vmul.f32 %v896_v34, %v419_v13  ;;  %v383_v18 = vmul.f32 %v878_v26, %v372_v17  ;;  %v433_v19 = vmul.f32 %v896_v34, %v990_v15  ;;  %v472_v20 = vmul.f32 %v907_v39, %v867_v21 }
  0x9f   :  { %v473_v26 = vmul.f32 %v907_v39, %v869_v22  ;;  %v423_v46 = vrot.slane %v921_v45, %v942_v53  ;;  %v474_v25 = vmul.f32 %v907_v39, %v888_v31  ;;  %v475_v29 = vmul.f32 %v907_v39, %v881_v27 }
  0xa0   :  { %349 = vrot.lane.b32.xlu1 %v332_v9, %s778_s0  ;;  %v476_v22 = vmul.f32 %v907_v39, %v900_v37  ;;  %v516_v45 = vmul.f32 %v909_v40, %v903_v38  ;;  %v517_v31 = vmul.f32 %v909_v40, %v915_v43  ;;  %v518_v27 = vmul.f32 %v909_v40, %v919_v44 }
  0xa1   :  { %396 = vrot.lane.b32.xlu0 %v381_v10, %s778_s0  ;;  %v434_v21 = vmul.f32 %v896_v34, %v423_v46  ;;  %v477_v34 = vmul.f32 %v907_v39, %v932_v49  ;;  %v519_v37 = vmul.f32 %v909_v40, %v940_v52  ;;  %v520_v38 = vmul.f32 %v909_v40, %v947_v54 }
  0xa2   :  { %v559_v43 = vmul.f32 %v927_v47, %v950_v55  ;;  %v560_v39 = vmul.f32 %v927_v47, %v954_v59  ;;  %v561_v44 = vmul.f32 %v927_v47, %v977_v5  ;;  %v521_v49 = vmul.f32 %v909_v40, %v1008_v51 }
  0xa3   :  { %v562_v52 = vmul.f32 %v927_v47, %v958_v60  ;;  %v563_v53 = vmul.f32 %v927_v47, %v961_v61  ;;  %v602_v54 = vmul.f32 %v929_v48, %v970_v3  ;;  %v603_v40 = vmul.f32 %v929_v48, %v973_v4 }
  0xa4   :  { %398 = vrot.lane.b32.xlu1 %v382_v11, %s778_s0  ;;  %v604_v55 = vmul.f32 %v929_v48, %v419_v13  ;;  %v564_v59 = vmul.f32 %v927_v47, %v372_v17  ;;  %v605_v60 = vmul.f32 %v929_v48, %v987_v14  ;;  %v780_v61 = vmov 0.0  }
  0xa5   :  { %441 = vrot.lane.b32.xlu0 %v429_v12, %s778_s0  ;;  %118 = vst.msk [vmem:[#allocation2] sm:$0xff] %vm117_vm0, %v780_v61  ;;  %119 = vst.msk [vmem:[#allocation3] sm:$0xff] %vm117_vm0, %v780_v61  ;;  %v606_v3 = vmul.f32 %v929_v48, %v990_v15  ;;  %v607_v4 = vmul.f32 %v929_v48, %v423_v46 }
  0xa8   :  { %443 = vrot.lane.b32.xlu1 %v430_v33, %s778_s0 }
  0xa9   :  { %445 = vrot.lane.b32.xlu0 %v431_v16, %s778_s0 }
  0xac   :  { %400 = vrot.lane.b32.xlu1 %v383_v18, %s778_s0 }
  0xad   :  { %447 = vrot.lane.b32.xlu0 %v432_v23, %s778_s0 }
  0xb0   :  { %449 = vrot.lane.b32.xlu1 %v433_v19, %s778_s0 }
  0xb1   :  { %484 = vrot.lane.b32.xlu0 %v472_v20, %s779_s2 }
  0xb4   :  { %486 = vrot.lane.b32.xlu1 %v473_v26, %s779_s2 }
  0xb5   :  { %488 = vrot.lane.b32.xlu0 %v474_v25, %s779_s2 }
  0xb8   :  { %451 = vrot.lane.b32.xlu1 %v434_v21, %s778_s0 }
  0xb9   :  { %490 = vrot.lane.b32.xlu0 %v475_v29, %s779_s2 }
  0xbc   :  { %492 = vrot.lane.b32.xlu1 %v476_v22, %s779_s2 }
  0xbd   :  { %528 = vrot.lane.b32.xlu0 %v516_v45, %s779_s2 }
  0xc0   :  { %530 = vrot.lane.b32.xlu1 %v517_v31, %s779_s2 }
  0xc1   :  { %532 = vrot.lane.b32.xlu0 %v518_v27, %s779_s2 }
  0xc4   :  { %494 = vrot.lane.b32.xlu1 %v477_v34, %s779_s2 }
  0xc5   :  { %534 = vrot.lane.b32.xlu0 %v519_v37, %s779_s2 }
  0xc8   :  { %536 = vrot.lane.b32.xlu1 %v520_v38, %s779_s2 }
  0xc9   :  { %571 = vrot.lane.b32.xlu0 %v559_v43, %s779_s2 }
  0xcc   :  { %573 = vrot.lane.b32.xlu1 %v560_v39, %s779_s2 }
  0xcd   :  { %575 = vrot.lane.b32.xlu0 %v561_v44, %s779_s2 }
  0xd0   :  { %538 = vrot.lane.b32.xlu1 %v521_v49, %s779_s2 }
  0xd1   :  { %577 = vrot.lane.b32.xlu0 %v562_v52, %s779_s2 }
  0xd4   :  { %579 = vrot.lane.b32.xlu1 %v563_v53, %s779_s2 }
  0xd5   :  { %614 = vrot.lane.b32.xlu0 %v602_v54, %s779_s2 }
  0xd8   :  { %616 = vrot.lane.b32.xlu1 %v603_v40, %s779_s2 }
  0xd9   :  { %618 = vrot.lane.b32.xlu0 %v604_v55, %s779_s2 }
  0xdc   :  { %581 = vrot.lane.b32.xlu1 %v564_v59, %s779_s2 }
  0xdd   :  { %620 = vrot.lane.b32.xlu0 %v605_v60, %s779_s2 }
  0xe0   :  { %622 = vrot.lane.b32.xlu1 %v606_v3, %s779_s2 }
  0xe1   :  { %624 = vrot.lane.b32.xlu0 %v607_v4, %s779_s2 }
  0xf6   :  { %v288_v47 = vpop.permute.xlu1 %287  ;;  %v290_v5 = vpop.permute.xlu0 %289 }
  0xf7   :  { %v300_v14 = vsel %vm299_vm1, %v288_v47, %v290_v5 }
  0xf8   :  { %v308_v24 = vadd.f32 %v300_v14, %v1016_v6 }
  0xfa   :  { %v292_v30 = vpop.permute.xlu1 %291  ;;  %v294_v35 = vpop.permute.xlu0 %293 }
  0xfb   :  { %v301_v32 = vsel %vm299_vm1, %v290_v5, %v292_v30 }
  0xfc   :  { %v309_v36 = vadd.f32 %v301_v32, %v1018_v28 }
  0xfe   :  { %v296_v15 = vpop.permute.xlu1 %295  ;;  %v340_v41 = vpop.permute.xlu0 %339 }
  0xff   :  { %v302_v48 = vsel %vm299_vm1, %v294_v35, %v296_v15 }
 0x100   :  { %v310_v42 = vadd.f32 %v302_v48, %v1020_v7 }
 0x102   :  { %v342_v50 = vpop.permute.xlu1 %341  ;;  %v344_v51 = vpop.permute.xlu0 %343 }
 0x103   :  { %v351_v56 = vsel %vm299_vm1, %v340_v41, %v342_v50  ;;  %v352_v57 = vsel %vm299_vm1, %v342_v50, %v344_v51 }
 0x104   :  { %v359_v58 = vadd.f32 %v351_v56, %v308_v24  ;;  %v360_v62 = vadd.f32 %v352_v57, %v309_v36 }
 0x106   :  { %v298_v63 = vpop.permute.xlu1 %297 }
 0x107   :  { %v303_v0 = vsel %vm299_vm1, %v296_v15, %v298_v63  ;;  %v346_v1 = vpop.permute.xlu0 %345 }
 0x108   :  { %v311_v2 = vadd.f32 %v303_v0, %v1022_v8 }
 0x10a   :  { %v348_v6 = vpop.permute.xlu1 %347 }
 0x10b   :  { %v391_v28 = vpop.permute.xlu0 %390  ;;  %v353_v54 = vsel %vm299_vm1, %v346_v1, %v348_v6 }
 0x10c   :  { %v361_v14 = vadd.f32 %v353_v54, %v310_v42 }
 0x10e   :  { %v393_v9 = vpop.permute.xlu1 %392 }
 0x10f   :  { %v395_v10 = vpop.permute.xlu0 %394  ;;  %v402_v43 = vsel %vm299_vm1, %v391_v28, %v393_v9 }
 0x110   :  { %v403_v39 = vsel %vm299_vm1, %v393_v9, %v395_v10  ;;  %v410_v40 = vadd.f32 %v402_v43, %v359_v58 }
 0x111   :  { %v411_v55 = vadd.f32 %v403_v39, %v360_v62 }
 0x112   :  { %v350_v11 = vpop.permute.xlu1 %349 }
 0x113   :  { %v397_v7 = vpop.permute.xlu0 %396  ;;  %v354_v61 = vsel %vm299_vm1, %v348_v6, %v350_v11 }
 0x114   :  { %v362_v48 = vadd.f32 %v354_v61, %v311_v2 }
 0x116   :  { %v399_v12 = vpop.permute.xlu1 %398 }
 0x117   :  { %v442_v13 = vpop.permute.xlu0 %441  ;;  %v404_v3 = vsel %vm299_vm1, %v397_v7, %v399_v12 }
 0x118   :  { %v412_v50 = vadd.f32 %v404_v3, %v361_v14 }
 0x11a   :  { %v444_v33 = vpop.permute.xlu1 %443 }
 0x11b   :  { %v446_v16 = vpop.permute.xlu0 %445  ;;  %v453_v49 = vsel %vm299_vm1, %v442_v13, %v444_v33 }
 0x11c   :  { %v454_v52 = vsel %vm299_vm1, %v444_v33, %v446_v16  ;;  %v461_v4 = vadd.f32 %v453_v49, %v410_v40 }
 0x11d   :  { %v462_v47 = vadd.f32 %v454_v52, %v411_v55  ;;  %v638_v55 = vld [vmem:[#allocation2] sm:$0xff] }
 0x11e   :  { %v401_v17 = vpop.permute.xlu1 %400 }
 0x11f   :  { %v448_v18 = vpop.permute.xlu0 %447  ;;  %v405_v32 = vsel %vm299_vm1, %v399_v12, %v401_v17 }
 0x120   :  { %v413_v63 = vadd.f32 %v405_v32, %v362_v48 }
 0x122   :  { %v450_v23 = vpop.permute.xlu1 %449 }
 0x123   :  { %v485_v19 = vpop.permute.xlu0 %484  ;;  %v455_v36 = vsel %vm299_vm1, %v448_v18, %v450_v23 }
 0x124   :  { %v463_v0 = vadd.f32 %v455_v36, %v412_v50  ;;  %v673_v50 = vld [vmem:[%s1189_s5] sm:$0xff] }
 0x126   :  { %v487_v20 = vpop.permute.xlu1 %486 }
 0x127   :  { %v489_v26 = vpop.permute.xlu0 %488  ;;  %v497_v59 = vsel %vm496_vm2, %v485_v19, %v487_v20 }
 0x128   :  { %v498_v60 = vsel %vm496_vm2, %v487_v20, %v489_v26  ;;  %v505_v15 = vadd.f32 %v497_v59, %v461_v4 }
 0x129   :  { %v506_v41 = vadd.f32 %v498_v60, %v462_v47  ;;  %v647_v60 = vld [vmem:[#allocation3] sm:$0xff] }
 0x12a   :  { %v452_v46 = vpop.permute.xlu1 %451 }
 0x12b   :  { %v491_v25 = vpop.permute.xlu0 %490  ;;  %v456_v57 = vsel %vm299_vm1, %v450_v23, %v452_v46 }
 0x12c   :  { %v464_v7 = vadd.f32 %v456_v57, %v413_v63 }
 0x12e   :  { %v493_v21 = vpop.permute.xlu1 %492 }
 0x12f   :  { %v529_v8 = vpop.permute.xlu0 %528  ;;  %v499_v1 = vsel %vm496_vm2, %v491_v25, %v493_v21 }
 0x130   :  { %v507_v13 = vadd.f32 %v499_v1, %v463_v0 }
 0x132   :  { %v531_v29 = vpop.permute.xlu1 %530 }
 0x133   :  { %v533_v22 = vpop.permute.xlu0 %532  ;;  %v540_v24 = vsel %vm496_vm2, %v529_v8, %v531_v29 }
 0x134   :  { %v541_v30 = vsel %vm496_vm2, %v531_v29, %v533_v22  ;;  %v548_v42 = vadd.f32 %v540_v24, %v505_v15  ;;  %v669_v15 = vld [vmem:[%s1188_s4] sm:$0xff]  ;;  %s753_s4 = scalar_lea.vmem %s708_s10, 512 }
 0x135   :  { %v549_v58 = vadd.f32 %v541_v30, %v506_v41  ;;  %p754_p0 = scmp.ne.s32.totalorder %s708_s10, %s753_s4  ;;  %p759_p2 = scmp.lt.s32.totalorder %s753_s4, %s753_s4 }
 0x136   :  { %v495_v45 = vpop.permute.xlu1 %494 }
 0x137   :  { %v535_v31 = vpop.permute.xlu0 %534  ;;  %v500_v9 = vsel %vm496_vm2, %v493_v21, %v495_v45  ;;  %p760_p3 = por %p759_p2, %p758_p1 }
 0x138   :  { %v508_v23 = vadd.f32 %v500_v9, %v464_v7 }
 0x139   :  { %p761_p4 = pnand %p760_p3, %p754_p0 }
 0x13a   :  { %v537_v27 = vpop.permute.xlu1 %536 }
 0x13b   :  { %v572_v34 = vpop.permute.xlu0 %571  ;;  %v542_v12 = vsel %vm496_vm2, %v535_v31, %v537_v27 }
 0x13c   :  { %v550_v26 = vadd.f32 %v542_v12, %v507_v13 }
 0x13e   :  { %v574_v37 = vpop.permute.xlu1 %573 }
 0x13f   :  { %v576_v38 = vpop.permute.xlu0 %575  ;;  %v583_v51 = vsel %vm496_vm2, %v572_v34, %v574_v37 }
 0x140   :  { %v584_v56 = vsel %vm496_vm2, %v574_v37, %v576_v38  ;;  %v591_v2 = vadd.f32 %v583_v51, %v548_v42 }
 0x141   :  { %v592_v10 = vadd.f32 %v584_v56, %v549_v58 }
 0x142   :  { %v539_v44 = vpop.permute.xlu1 %538 }
 0x143   :  { %v578_v53 = vpop.permute.xlu0 %577  ;;  %v543_v33 = vsel %vm496_vm2, %v537_v27, %v539_v44 }
 0x144   :  { %v551_v25 = vadd.f32 %v543_v33, %v508_v23 }
 0x146   :  { %v580_v5 = vpop.permute.xlu1 %579 }
 0x147   :  { %v615_v35 = vpop.permute.xlu0 %614  ;;  %v585_v19 = vsel %vm496_vm2, %v578_v53, %v580_v5 }
 0x148   :  { %v593_v21 = vadd.f32 %v585_v19, %v550_v26 }
 0x14a   :  { %v617_v62 = vpop.permute.xlu1 %616 }
 0x14b   :  { %v626_v6 = vsel %vm496_vm2, %v615_v35, %v617_v62  ;;  %v619_v28 = vpop.permute.xlu0 %618 }
 0x14c   :  { %v627_v11 = vsel %vm496_vm2, %v617_v62, %v619_v28  ;;  %v634_v16 = vadd.f32 %v626_v6, %v591_v2 }
 0x14d   :  { %v635_v17 = vadd.f32 %v627_v11, %v592_v10 }
 0x14e   :  { %v582_v18 = vpop.permute.xlu1 %581  ;;  %v648_v8 = vmul.f32 %v634_v16, %v634_v16 }
 0x14f   :  { %v621_v20 = vpop.permute.xlu0 %620  ;;  %v586_v46 = vsel %vm496_vm2, %v580_v5, %v582_v18  ;;  %v649_v29 = vmul.f32 %v635_v17, %v635_v17  ;;  %v639_v38 = vadd.f32 %v635_v17, %v634_v16 }
 0x150   :  { %v594_v45 = vadd.f32 %v586_v46, %v551_v25 }
 0x151   :  { %v652_v49 = vadd.f32 %v649_v29, %v648_v8 }
 0x152   :  { %v623_v22 = vpop.permute.xlu1 %622 }
 0x153   :  { %v628_v31 = vsel %vm496_vm2, %v621_v20, %v623_v22  ;;  %v625_v34 = vpop.permute.xlu0 %624 }
 0x154   :  { %v636_v27 = vadd.f32 %v628_v31, %v593_v21  ;;  %v629_v37 = vsel %vm496_vm2, %v623_v22, %v625_v34 }
 0x155   :  { %v637_v43 = vadd.f32 %v629_v37, %v594_v45 }
 0x156   :  { %v640_v39 = vadd.f32 %v639_v38, %v636_v27  ;;  %v650_v44 = vmul.f32 %v636_v27, %v636_v27 }
 0x157   :  { %v651_v53 = vmul.f32 %v637_v43, %v637_v43 }
 0x158   :  { %v641_v52 = vadd.f32 %v640_v39, %v637_v43  ;;  %v653_v54 = vadd.f32 %v652_v49, %v650_v44 }
 0x15a   :  { %642 = vadd.xlane.f32.xlu1 %v641_v52  ;;  %v654_v40 = vadd.f32 %v653_v54, %v651_v53 }
 0x15c   :  { %655 = vadd.xlane.f32.xlu0 %v654_v40 }
 0x1e7   :  { %v643_v59 = vpop.xlane.xlu1 %642 }
 0x1e8   :  { %v644_v61 = vadd.f32 %v643_v59, %v638_v55 }
 0x1e9   :  { %v656_v3 = vpop.xlane.xlu0 %655 }
 0x1ea   :  { %646 = vst.msk [vmem:[#allocation2] sm:$0xff] %vm117_vm0, %v644_v61  ;;  %v657_v4 = vadd.f32 %v656_v3, %v647_v60 }
 0x1ec   :  { %658 = vst.msk [vmem:[#allocation3] sm:$0xff] %vm117_vm0, %v657_v4 }
 0x1f1   :  { %v662_v47 = vld [vmem:[#allocation2] sm:$0xff] }
 0x1f2   :  { %v663_v5 = vmul.f32 0.001953125, %v662_v47 }
 0x1f3   :  { %v664_v14 = vld [vmem:[#allocation3] sm:$0xff] }
 0x1f4   :  { %v665_v24 = vmul.f32 0.001953125, %v664_v14  ;;  %v666_v30 = vmul.f32 %v663_v5, %v663_v5 }
 0x1f6   :  { %v667_v35 = vsub.f32 %v665_v24, %v666_v30 }
 0x1f8   :  { %v668_v32 = vmax.f32 %v667_v35, 0.0 }
 0x1fa   :  { %v670_v36 = vadd.f32 1e-05, %v668_v32 }
 0x1fc   :  { %751 = vrsqrt.f32 %v670_v36 }
 0x206   :  { %v752_v41 = vpop.eup %751 }
 0x207   :  { %v672_v48 = vmul.f32 %v752_v41, %v669_v15 }
 0x209   :  { %678 = vperm.xlu0 %747, %v672_v48   ;;  %v674_v51 = vmul.f32 %v672_v48, %v663_v5 }
 0x20b   :  { %v675_v56 = vsub.f32 %v673_v50, %v674_v51 }
 0x20d   :  { %687 = vperm.xlu1 %748, %v675_v56  }
 0x288   :  { %v679_v57 = vpop.permute.xlu0 %678 }
 0x289   :  { %v681_v42 = vmul.f32 %v679_v57, %v634_v16  ;;  %v682_v58 = vmul.f32 %v679_v57, %v635_v17  ;;  %v683_v62 = vmul.f32 %v679_v57, %v636_v27  ;;  %v684_v63 = vmul.f32 %v679_v57, %v637_v43 }
 0x28c   :  { %v688_v0 = vpop.permute.xlu1 %687 }
 0x28d   :  { %v690_v1 = vadd.f32 %v688_v0, %v681_v42  ;;  %v691_v6 = vadd.f32 %v688_v0, %v682_v58  ;;  %v692_v28 = vadd.f32 %v688_v0, %v683_v62  ;;  %v693_v9 = vadd.f32 %v688_v0, %v684_v63 }
 0x28f   :  { %v694_v2 = vmax.f32 %v690_v1, 0.0  ;;  %v695_v10 = vmax.f32 %v691_v6, 0.0  ;;  %v696_v11 = vmax.f32 %v692_v28, 0.0  ;;  %v697_v7 = vmax.f32 %v693_v9, 0.0 }
 0x291   :  { %698 = vst [vmem:[#allocation6] sm:$0xff] %v694_v2  ;;  %699 = vst [vmem:[#allocation6 + $0x8] sm:$0xff] %v695_v10 }
 0x292   :  { %700 = vst [vmem:[#allocation6 + $0x10] sm:$0xff] %v696_v11  ;;  %701 = vst [vmem:[#allocation6 + $0x18] sm:$0xff] %v697_v7 }
 0x293   :  { %764 = shalt.err (!%p761_p4)
}
 0x294   :  { %s765_s12 = scalar_lea.hbm %s1190_s6, 512 }
 0x295   :  { %p766_p5 = scmp.ne.s32.totalorder %s1190_s6, %s765_s12  ;;  %p769_p6 = scmp.lt.u32.totalorder %s765_s12, %s1190_s6 }
 0x297   :  { %p771_p7 = pnand %p769_p6, %p766_p5 }
 0x299   :  { %774 = shalt.err (!%p771_p7)
}
 0x29a   :  { %s782_s16 = smov 256   ;;  %s783_s17 = smov 16  }
 0x29b   :  { %713 = dma.vmem_to_hbm [thread:$0]  %s708_s10, 512, %s1190_s6, [#allocation7], %s782_s16, %s782_s16, %s783_s17  }
 0x29c   :  { %775 = dma.done.wait [#allocation7], 512  }
 0x29d   :  { %776 = vsyncadd [#allocation7], 4294966784 }
 0x29e   :  { %717 = vsyncpa [#allocation7], 1 }

</bundles_post_ra>
